<compile_context>
chip_gen: v7x
topology: tpu7x:2x2x1
jax: 0.10.0
libtpu: 0.0.40
codegen_flags: <defaults>
</compile_context>

<pallas_src>
import functools

import jax
import jax.numpy as jnp
from jax.experimental import pallas as pl
from jax.experimental.pallas import tpu as pltpu


def _round_up(x, m):
    return ((x + m - 1) // m) * m


def _cw_loss_kernel(logits_ref, targets_ref, out_ref, acc_ref, *, margin, batch_size):
    p = pl.program_id(0)                 # partial (per-core) index
    i = pl.program_id(1)                 # batch-tile index within this partial
    tiles_per_part = pl.num_programs(1)

    @pl.when(i == 0)
    def _():
        acc_ref[...] = jnp.zeros_like(acc_ref)

    logits = logits_ref[...].astype(jnp.float32)   # (TB, C) f32 in-register
    targets = targets_ref[...]                     # (TB, 1) int32
    tb, c = logits.shape

    class_ids = jax.lax.broadcasted_iota(jnp.int32, (tb, c), 1)
    is_target = class_ids == targets               # (TB, C) bool, no gather

    # self_loss  = logit at the target class
    self_loss = jnp.sum(jnp.where(is_target, logits, 0.0), axis=1, keepdims=True)
    # other_loss = max over non-target classes (target forced to -1000, as in ref)
    other_loss = jnp.max(
        jnp.where(is_target, jnp.float32(-1000.0), logits), axis=1, keepdims=True
    )

    per_sample = jnp.maximum(self_loss - other_loss + jnp.float32(margin), 0.0)

    # Mask rows that fall past the true batch (ragged last tile / phantom tiles).
    row_start = (p * tiles_per_part + i) * tb
    row_ids = row_start + jax.lax.broadcasted_iota(jnp.int32, (tb, 1), 0)
    per_sample = jnp.where(row_ids < batch_size, per_sample, 0.0)

    acc_ref[...] += jnp.sum(per_sample)

    @pl.when(i == tiles_per_part - 1)
    def _():
        out_ref[0] = -acc_ref[...]                 # partial loss for this core


def cw_loss(logits, targets, *, num_classes, margin=50.0, reduce=True,
            block_rows=None):
    """Pallas implementation of CWLoss.forward(logits, targets)."""
    assert logits.ndim == 2 and logits.shape[1] == num_classes
    b, c = logits.shape
    targets2d = targets.astype(jnp.int32).reshape(b, 1)

    itemsize = jnp.dtype(logits.dtype).itemsize

    # Tile sizing: ~2 MiB per logits pipeline buffer (safe under the default
    # scoped-VMEM limit on v5e/v6e/v7x with double buffering), TB multiple of 8.
    if block_rows is not None:
        tb = min(_round_up(block_rows, 8), _round_up(b, 8))
    else:
        target_bytes = 2 * 1024 * 1024
        cap = max(8, (target_bytes // max(1, c * itemsize)) // 8 * 8)
        cap = min(cap, 1024)
        tb = min(cap, _round_up(b, 8))

    total_tiles = pl.cdiv(b, tb)
    num_partials = 2 if total_tiles >= 2 else 1        # split across v7x's 2 TCs
    tiles_per_part = pl.cdiv(total_tiles, num_partials)

    def tile_idx(p, i):
        # Phantom tiles (p*tiles_per_part + i >= total_tiles) are clamped to a
        # valid block; their rows are masked to zero inside the kernel.
        return jnp.minimum(p * tiles_per_part + i, total_tiles - 1)

    kernel = functools.partial(_cw_loss_kernel, margin=float(margin), batch_size=b)

    partials = pl.pallas_call(
        kernel,
        out_shape=jax.ShapeDtypeStruct((num_partials, 1, 1), jnp.float32),
        grid=(num_partials, tiles_per_part),
        in_specs=[
            pl.BlockSpec((tb, c), lambda p, i: (tile_idx(p, i), 0)),   # logits tile
            pl.BlockSpec((tb, 1), lambda p, i: (tile_idx(p, i), 0)),   # targets tile
        ],
        out_specs=pl.BlockSpec((1, 1, 1), lambda p, i: (p, 0, 0)),
        scratch_shapes=[pltpu.VMEM((1, 1), jnp.float32)],
        compiler_params=pltpu.CompilerParams(
            dimension_semantics=("parallel", "arbitrary")),
        cost_estimate=pl.CostEstimate(
            flops=6 * b * c,
            transcendentals=0,
            bytes_accessed=b * c * itemsize + b * 4 + num_partials * 4),
    )(logits, targets2d)

    loss = jnp.sum(partials)
    if reduce:
        # mean over the FULL batch, once, in the wrapper (after summing partials)
        loss = loss / jnp.float32(b)
    return loss


def _cw_loss_ref(logits, targets, *, num_classes, margin=50.0, reduce=True):
    logits = logits.astype(jnp.float32)
    onehot = jax.nn.one_hot(targets, num_classes, dtype=jnp.float32)
    self_loss = jnp.sum(onehot * logits, axis=1)
    other_loss = jnp.max((1.0 - onehot) * logits - onehot * 1000.0, axis=1)
    loss = -jnp.sum(jnp.maximum(self_loss - other_loss + margin, 0.0))
    if reduce:
        loss = loss / logits.shape[0]
    return loss


if __name__ == "__main__":
    num_classes = 16
    margin = 50.0
    key = jax.random.PRNGKey(0)

    # Case 1: small batch, single tile, single partial.
    k_logits, k_targets = jax.random.split(key)
    batch = 8
    logits = jax.random.normal(k_logits, (batch, num_classes), dtype=jnp.float32) * 5.0
    targets = jax.random.randint(k_targets, (batch,), 0, num_classes, dtype=jnp.int32)

    out = cw_loss(logits, targets, num_classes=num_classes, margin=margin, reduce=True)
    out = jax.block_until_ready(out)
    ref = _cw_loss_ref(logits, targets, num_classes=num_classes, margin=margin, reduce=True)
    assert jnp.allclose(out, ref, atol=1e-5, rtol=1e-5), (out, ref)

    # Case 2: ragged batch + forced small tiles -> exercises the 2-partial grid,
    # accumulator init/finalize, phantom-tile clamping and row masking.
    k_logits2, k_targets2 = jax.random.split(k_logits)
    batch2 = 20
    logits2 = jax.random.normal(k_logits2, (batch2, num_classes), dtype=jnp.float32) * 5.0
    targets2 = jax.random.randint(k_targets2, (batch2,), 0, num_classes, dtype=jnp.int32)

    out2 = cw_loss(logits2, targets2, num_classes=num_classes, margin=margin,
                   reduce=True, block_rows=8)
    out2 = jax.block_until_ready(out2)
    ref2 = _cw_loss_ref(logits2, targets2, num_classes=num_classes, margin=margin, reduce=True)
    assert jnp.allclose(out2, ref2, atol=1e-5, rtol=1e-5), (out2, ref2)

    print("KERNEL_OK")
</pallas_src>

<mosaic_0001>
module attributes {stable_mosaic.version = 11 : i64} {
  func.func @_cw_loss_kernel(%arg0: i32, %arg1: i32, %arg2: memref<8x16xf32, #tpu.memory_space<vmem>>, %arg3: memref<8x1xi32, #tpu.memory_space<vmem>>, %arg4: memref<1x1x1xf32, #tpu.memory_space<vmem>>, %arg5: memref<1x1xf32, #tpu.memory_space<vmem>>) attributes {dimension_semantics = [#tpu.dimension_semantics<parallel>, #tpu.dimension_semantics<arbitrary>], iteration_bounds = array<i64: 1, 1>, scalar_prefetch = 0 : i64, scratch_operands = 1 : i64, tpu.core_type = #tpu.core_type<tc>, window_params = [{transform_indices = @transform_0, window_bounds = array<i64: 8, 16>}, {transform_indices = @transform_1, window_bounds = array<i64: 8, 1>}, {transform_indices = @transform_2, window_bounds = array<i64: 1, 1, 1>}]} {
    %c0_i32 = arith.constant 0 : i32
    %0 = arith.cmpi eq, %arg1, %c0_i32 : i32
    %1 = arith.extui %0 : i1 to i32
    %c0_i32_0 = arith.constant 0 : i32
    %2 = arith.cmpi ne, %1, %c0_i32_0 : i32
    scf.if %2 {
      %cst_18 = arith.constant 0.000000e+00 : f32
      %42 = vector.broadcast %cst_18 : f32 to vector<1x1xf32>
      %c0_19 = arith.constant 0 : index
      %c0_20 = arith.constant 0 : index
      %43 = vector.load %arg5[%c0_19, %c0_20] : memref<1x1xf32, #tpu.memory_space<vmem>>, vector<1x1xf32>
      tpu.vector_store %arg5[%c0_19, %c0_20], %42 {strides = array<i32>} : memref<1x1xf32, #tpu.memory_space<vmem>>, vector<1x1xf32>,
    } else {
    }
    %c0 = arith.constant 0 : index
    %c0_1 = arith.constant 0 : index
    %3 = vector.load %arg2[%c0, %c0_1] : memref<8x16xf32, #tpu.memory_space<vmem>>, vector<8x16xf32>
    %c0_2 = arith.constant 0 : index
    %c0_3 = arith.constant 0 : index
    %4 = vector.load %arg3[%c0_2, %c0_3] : memref<8x1xi32, #tpu.memory_space<vmem>>, vector<8x1xi32>
    %5 = tpu.iota {dimensions = array<i32: 1>} : vector<8x16xi32>
    %6 = vector.broadcast %4 : vector<8x1xi32> to vector<8x16xi32>
    %7 = arith.cmpi eq, %5, %6 : vector<8x16xi32>
    %cst = arith.constant 0.000000e+00 : f32
    %8 = vector.broadcast %cst : f32 to vector<8x16xf32>
    %9 = arith.select %7, %3, %8 : vector<8x16xi1>, vector<8x16xf32>
    %cst_4 = arith.constant dense<0.000000e+00> : vector<8xf32>
    %10 = vector.multi_reduction <add>, %9, %cst_4 [1] : vector<8x16xf32> to vector<8xf32>
    %11 = vector.shape_cast %10 : vector<8xf32> to vector<8x1xf32>
    %cst_5 = arith.constant -1.000000e+03 : f32
    %12 = vector.broadcast %cst_5 : f32 to vector<8x16xf32>
    %13 = arith.select %7, %12, %3 : vector<8x16xi1>, vector<8x16xf32>
    %cst_6 = arith.constant dense<0xFF800000> : vector<8xf32>
    %14 = vector.multi_reduction <maximumf>, %13, %cst_6 [1] : vector<8x16xf32> to vector<8xf32>
    %15 = vector.shape_cast %14 : vector<8xf32> to vector<8x1xf32>
    %16 = arith.subf %11, %15 : vector<8x1xf32>
    %cst_7 = arith.constant 5.000000e+01 : f32
    %17 = vector.broadcast %cst_7 : f32 to vector<8x1xf32>
    %18 = arith.addf %16, %17 : vector<8x1xf32>
    %cst_8 = arith.constant 0.000000e+00 : f32
    %19 = vector.broadcast %cst_8 : f32 to vector<8x1xf32>
    %20 = arith.maximumf %18, %19 : vector<8x1xf32>
    %c1_i32 = arith.constant 1 : i32
    %21 = arith.muli %arg0, %c1_i32 : i32
    %22 = arith.addi %21, %arg1 : i32
    %c8_i32 = arith.constant 8 : i32
    %23 = arith.muli %22, %c8_i32 : i32
    %24 = tpu.iota {dimensions = array<i32: 0>} : vector<8x1xi32>
    %25 = vector.broadcast %23 : i32 to vector<8x1xi32>
    %26 = arith.addi %25, %24 : vector<8x1xi32>
    %c8_i32_9 = arith.constant 8 : i32
    %27 = vector.broadcast %c8_i32_9 : i32 to vector<8x1xi32>
    %28 = arith.cmpi slt, %26, %27 : vector<8x1xi32>
    %cst_10 = arith.constant 0.000000e+00 : f32
    %29 = vector.broadcast %cst_10 : f32 to vector<8x1xf32>
    %30 = arith.select %28, %20, %29 : vector<8x1xi1>, vector<8x1xf32>
    %c0_11 = arith.constant 0 : index
    %c0_12 = arith.constant 0 : index
    %31 = vector.load %arg5[%c0_11, %c0_12] : memref<1x1xf32, #tpu.memory_space<vmem>>, vector<1x1xf32>
    %32 = vector.shape_cast %30 : vector<8x1xf32> to vector<1x8x1xf32>
    %cst_13 = arith.constant dense<0.000000e+00> : vector<1xf32>
    %33 = vector.multi_reduction <add>, %32, %cst_13 [1, 2] : vector<1x8x1xf32> to vector<1xf32>
    %34 = vector.shape_cast %33 : vector<1xf32> to vector<1x1x1xf32>
    %35 = vector.extract %34[0, 0, 0] : f32 from vector<1x1x1xf32>
    %36 = vector.broadcast %35 : f32 to vector<1x1xf32>
    %37 = arith.addf %31, %36 : vector<1x1xf32>
    %c0_14 = arith.constant 0 : index
    %c0_15 = arith.constant 0 : index
    %38 = vector.load %arg5[%c0_14, %c0_15] : memref<1x1xf32, #tpu.memory_space<vmem>>, vector<1x1xf32>
    tpu.vector_store %arg5[%c0_14, %c0_15], %37 {strides = array<i32>} : memref<1x1xf32, #tpu.memory_space<vmem>>, vector<1x1xf32>,
    %c0_i32_16 = arith.constant 0 : i32
    %39 = arith.cmpi eq, %arg1, %c0_i32_16 : i32
    %40 = arith.extui %39 : i1 to i32
    %c0_i32_17 = arith.constant 0 : i32
    %41 = arith.cmpi ne, %40, %c0_i32_17 : i32
    scf.if %41 {
      %c0_18 = arith.constant 0 : index
      %c0_19 = arith.constant 0 : index
      %42 = vector.load %arg5[%c0_18, %c0_19] : memref<1x1xf32, #tpu.memory_space<vmem>>, vector<1x1xf32>
      %cst_20 = arith.constant 0.000000e+00 : f32
      %43 = vector.broadcast %cst_20 : f32 to vector<1x1xf32>
      %44 = arith.subf %43, %42 : vector<1x1xf32>
      %c0_21 = arith.constant 0 : index
      %c0_22 = arith.constant 0 : index
      %c0_23 = arith.constant 0 : index
      %45 = vector.load %arg4[%c0_21, %c0_22, %c0_23] : memref<1x1x1xf32, #tpu.memory_space<vmem>>, vector<1x1x1xf32>
      %46 = vector.shape_cast %45 : vector<1x1x1xf32> to vector<1x1xf32>
      %47 = vector.shape_cast %44 : vector<1x1xf32> to vector<1x1x1xf32>
      tpu.vector_store %arg4[%c0_21, %c0_22, %c0_23], %47 {strides = array<i32>} : memref<1x1x1xf32, #tpu.memory_space<vmem>>, vector<1x1x1xf32>,
    } else {
    }
    return
  }
  func.func @transform_0(%arg0: i32, %arg1: i32) -> (i32, i32) {
    %c1_i32 = arith.constant 1 : i32
    %0 = arith.muli %arg0, %c1_i32 : i32
    %1 = arith.addi %0, %arg1 : i32
    %c0_i32 = arith.constant 0 : i32
    %2 = arith.minsi %1, %c0_i32 : i32
    %c0_i32_0 = arith.constant 0 : i32
    %c0_i32_1 = arith.constant 0 : i32
    return %2, %c0_i32_0 : i32, i32
  }
  func.func @transform_1(%arg0: i32, %arg1: i32) -> (i32, i32) {
    %c1_i32 = arith.constant 1 : i32
    %0 = arith.muli %arg0, %c1_i32 : i32
    %1 = arith.addi %0, %arg1 : i32
    %c0_i32 = arith.constant 0 : i32
    %2 = arith.minsi %1, %c0_i32 : i32
    %c0_i32_0 = arith.constant 0 : i32
    %c0_i32_1 = arith.constant 0 : i32
    return %2, %c0_i32_0 : i32, i32
  }
  func.func @transform_2(%arg0: i32, %arg1: i32) -> (i32, i32, i32) {
    %c0_i32 = arith.constant 0 : i32
    %c0_i32_0 = arith.constant 0 : i32
    %c0_i32_1 = arith.constant 0 : i32
    return %arg0, %c0_i32, %c0_i32_0 : i32, i32, i32
  }
}

</mosaic_0001>

<bundles_post_ra>
// kernel: tpu_custom_call.1
= control target key start
LH: loop header
LB: loop body
LE: loop exit
PB: predicated region body
PF: predicated region fallthrough
CT: control target
= control target key end

     0   :  { %s217_s0 = inlined_call_operand.vmem [shape: f32[8,16], index: 0, kind: input, shape index: {}]   ;;  %s218_s1 = inlined_call_operand.vmem [shape: s32[8,1], index: 1, kind: input, shape index: {}]   ;;  %s219_s2 = inlined_call_operand.hbm [shape: f32[1,1,1], index: 2, kind: output, shape index: {}]  }
   0x1   :  { %v73_v0 = vld [vmem:[%s218_s1] sm:$0xff] }
   0x2   :  { %7 = vsyncpa [#allocation4], 0  ;;  %v178_v1 = vmov 0   ;;  %v74_v2 = vlaneseq  ;;  %v72_v4 = vld [vmem:[%s217_s0] sm:$0xff]  ;;  %vm81_vm0 = vcmask 130048   ;;  %vm101_vm2 = vcmask 7168  }
   0x3   :  { %153 = vset.pattern.permute.xlu0 %v178_v1  ;;  %vm70_vm3 = vcmask 0   ;;  %v179_v16 = vmov 0.0   ;;  %s180_s1 = smov [#allocation3]  }
   0x4   :  { %77 = vperm.xlu0 %153, %v73_v0   ;;  %v75_v3 = vand.u32 127, %v74_v2  ;;  %71 = vst.msk [vmem:[#allocation2] sm:$0x1] %vm70_vm3, %v179_v16  ;;  %s128_s13 = sshll.u32 %s180_s1, 4  ;;  %s129_s13 = int_to_ptr.vmem [resolvable:$true] %s128_s13 }
   0x5   :  { %s154_s14 = scalar_lea.vmem %s129_s13, 16  ;;  %s158_s15 = scalar_lea.vmem %s129_s13, 32 }
   0x6   :  { %p155_p0 = scmp.ne.s32.totalorder %s129_s13, %s154_s14  ;;  %p159_p1 = scmp.lt.s32.totalorder %s129_s13, %s129_s13 }
   0x7   :  { %p160_p2 = scmp.lt.s32.totalorder %s158_s15, %s154_s14 }
   0x9   :  { %p161_p3 = por %p160_p2, %p159_p1 }
   0xb   :  { %v100_v24 = vld [vmem:[#allocation2] sm:$0x1]  ;;  %p162_p4 = pnand %p161_p3, %p155_p0 }
  0x83   :  { %v78_v5 = vpop.permute.xlu0 %77 }
  0x84   :  { %vm79_vm1 = vcmp.eq.s32.totalorder %v75_v3, %v78_v5 }
  0x85   :  { %v85_v6 = vsel %vm79_vm1, -1000.0, %v72_v4  ;;  %v80_v7 = vsel %vm79_vm1, %v72_v4, 0.0 }
  0x86   :  { %v86_v8 = vsel %vm81_vm0, %v85_v6, -inf  ;;  %v82_v9 = vsel %vm81_vm0, %v80_v7, 0.0 }
  0x87   :  { %87 = vmax.xlane.f32.xlu1 %v86_v8  ;;  %83 = vadd.xlane.f32.xlu0 %v82_v9 }
 0x114   :  { %v88_v10 = vpop.xlane.xlu1 %87  ;;  %v84_v11 = vpop.xlane.xlu0 %83 }
 0x115   :  { %v89_v12 = vsub.f32 %v84_v11, %v88_v10 }
 0x117   :  { %v90_v13 = vadd.f32 50.0, %v89_v12 }
 0x119   :  { %v91_v14 = vmax.f32 %v90_v13, 0.0 }
 0x11b   :  { %v102_v15 = vsel %vm101_vm2, %v91_v14, 0.0 }
 0x11c   :  { %103 = vadd.xlane.f32.xlu1 %v102_v15 }
 0x1a9   :  { %v104_v17 = vpop.xlane.xlu1 %103 }
 0x1aa   :  { %v105_v18 = vrot.slane %v104_v17, 4 }
 0x1ac   :  { %v106_v19 = vadd.f32 %v105_v18, %v104_v17 }
 0x1ae   :  { %v107_v20 = vrot.slane %v106_v19, 2 }
 0x1b0   :  { %v108_v21 = vadd.f32 %v107_v20, %v106_v19 }
 0x1b2   :  { %v109_v22 = vrot.slane %v108_v21, 1 }
 0x1b4   :  { %v110_v23 = vadd.f32 %v109_v22, %v108_v21 }
 0x1b6   :  { %148 = vpush %v110_v23 }
 0x1e7   :  { %s149_s0 = spop %148 }
 0x1e8   :  { %v112_v25 = vstv %s149_s0 }
 0x1e9   :  { %v113_v26 = vadd.f32 %v112_v25, %v100_v24 }
 0x1eb   :  { %115 = vst.msk [vmem:[#allocation2] sm:$0x1] %vm70_vm3, %v113_v26 }
 0x1f2   :  { %v119_v27 = vld [vmem:[#allocation2] sm:$0x1] }
 0x1f3   :  { %v120_v28 = vsub.f32 0.0, %v119_v27 }
 0x1f5   :  { %121 = vst.msk [vmem:[#allocation3] sm:$0x1] %vm70_vm3, %v120_v28 }
 0x1f6   :  { %165 = shalt.err (!%p162_p4)
}
 0x1f7   :  { %s166_s18 = scalar_lea.hbm %s219_s2, 16 }
 0x1f8   :  { %p167_p5 = scmp.ne.s32.totalorder %s219_s2, %s166_s18  ;;  %p170_p6 = scmp.lt.u32.totalorder %s166_s18, %s219_s2 }
 0x1fa   :  { %p172_p7 = pnand %p170_p6, %p167_p5 }
 0x1fc   :  { %175 = shalt.err (!%p172_p7)
}
 0x1fd   :  { %131 = dma.vmem_to_hbm [thread:$0]  %s129_s13, 16, %s219_s2, [#allocation4]  }
 0x1fe   :  { %176 = dma.done.wait [#allocation4], 16  }
 0x1ff   :  { %177 = vsyncadd [#allocation4], 4294967280 }
 0x200   :  { %135 = vsyncpa [#allocation4], 1 }

</bundles_post_ra>
